<compile_context>
chip_gen: v7x
topology: tpu7x:2x2x1
jax: 0.10.0
libtpu: 0.0.40
codegen_flags: <defaults>
</compile_context>

<pallas_src>
import functools

import numpy as np
import jax
import jax.numpy as jnp
from jax.experimental import pallas as pl
from jax.experimental.pallas import tpu as pltpu


def _round_up(x, m):
    return (x + m - 1) // m * m


def pairwise_seq_conv_kernel(x_ref, w_ref, a_ref, srccnt_ref, invden_ref,
                             bseq_ref, bpw_ref, oseq_ref, opw_ref,
                             *, TB, Fsp, Ocp, normalize):
    f32 = jnp.float32
    x = x_ref[...]                                             # (TB*Cp, Lp) bf16

    # One fused MXU pass: rows [0 : TB*Fsp] = seq_conv (k=1), next TB*Ocp rows
    # = spatial_conv tap 0 (z0), last TB*Ocp rows = tap 1 (z1).
    y = jnp.dot(w_ref[...], x, preferred_element_type=f32)     # (TB*(Fsp+2Ocp), Lp)

    nseq = TB * Fsp
    npw = TB * Ocp
    x_seq = y[0:nseq, :]
    z0 = y[nseq:nseq + npw, :]
    z1 = y[nseq + npw:nseq + 2 * npw, :]

    # Reassociated pairwise gather -> conv(k=2, stride=2) -> scatter:
    #   x_pw = (w0 @ x) * src_count + (w1 @ x) @ A
    t1 = jnp.dot(z1.astype(jnp.bfloat16), a_ref[...],
                 preferred_element_type=f32)                   # (TB*Ocp, Lp)
    x_pw = z0 * srccnt_ref[...] + t1
    if normalize:
        x_pw = x_pw * invden_ref[...]        # host-precomputed 1/clamp(adj_sum)

    # Full-block, lane-dense stores (no per-batch masked sub-sublane writes).
    oseq_ref[...] = x_seq + bseq_ref[...]
    opw_ref[...] = x_pw + bpw_ref[...]


def _vmem_estimate(TB, Cp, Fsp, Ocp, Lp):
    """Rough per-step VMEM footprint in bytes (buffers as configured)."""
    bf2, f4 = 2, 4
    Mr = TB * (Fsp + 2 * Ocp)
    x_blk = 2 * TB * Cp * Lp * bf2                 # activations, double-buffered
    w_blk = Mr * TB * Cp * bf2                     # fused weights, Buffered(1)
    a_blk = Lp * Lp * bf2                          # A, Buffered(1)
    small = 2 * Lp * f4 + (TB * Fsp + TB * Ocp) * 128 * f4   # rows / biases (lane-padded)
    o_blk = 2 * (TB * Fsp + TB * Ocp) * Lp * f4    # outputs, double-buffered
    interm = (Mr + 2 * TB * Ocp) * Lp * f4         # y, t1, x_pw live values
    return x_blk + w_blk + a_blk + small + o_blk + interm


def pairwise_seq_conv(seq, w_seq, w_conv, bias, adj_ds, src_count, adj_sum,
                      *, normalize=True, add_counts=True, batch_block=None):
    """Forward pass of PairwiseSeqConv (plain `_conv` pairwise path).

    seq:        (N, C, L) f32.
    w_seq:      (Fs, C)   seq_conv (k=1, no bias) weight.
    w_conv:     (Oc, C, 2) spatial_conv (k=2, stride=2, no bias) weight.
    bias:       (out_features,) f32 or None (module-level bias).
    adj_ds:     (L, L) with adj_ds[d, s] = #edges(dst=d, src=s)
                (== adj_pw[1::2]^T @ adj_pw[0::2]).
    src_count:  (L,)  #edges whose source is each position
                (== diag(adj_pw[0::2]^T @ adj_pw[0::2])).
    adj_sum:    (L,)  adj.to_dense().sum(dim=0).
    """
    N, C, L = seq.shape
    Fs = w_seq.shape[0]
    Oc = w_conv.shape[0]
    out_features = Fs + Oc + (1 if add_counts else 0)

    # Lane / sublane aligned padded sizes.
    Lp = _round_up(L, 128)
    Cp = _round_up(C, 8)
    Fsp = _round_up(Fs, 8)
    Ocp = _round_up(Oc, 8)

    # Batch tile: target M = TB*Cp ~ 256 on the fused matmuls, capped by N so
    # tiny batches do not burn padding FLOPs; keep block-diag waste bounded.
    if batch_block is not None:
        TB = max(1, int(batch_block))
    else:
        TB = max(1, min(N, max(1, 256 // Cp)))
        # Prefer >= 2 grid steps (v7x has 2 TensorCores) while keeping M >= 128.
        if TB == N and TB % 2 == 0 and (TB // 2) * Cp >= 128:
            TB //= 2
    Np = _round_up(N, TB)
    Mr = TB * (Fsp + 2 * Ocp)

    f32, bf16 = jnp.float32, jnp.bfloat16

    # Activations: batch/channel/length padded, flattened to (Np*Cp, Lp) so a
    # batch tile folds straight into the matmul M dimension.  bf16 halves DMA.
    x_pad = jnp.zeros((Np, Cp, Lp), bf16).at[:N, :C, :L].set(seq.astype(bf16))
    x_flat = x_pad.reshape(Np * Cp, Lp)

    # Fused block-diagonal per-batch-tile weights, grouped by role so the
    # kernel slices x_seq / z0 / z1 as contiguous sublane-aligned row blocks.
    eye = jnp.eye(TB, dtype=f32)
    wseq_pad = jnp.zeros((Fsp, Cp), f32).at[:Fs, :C].set(w_seq.astype(f32))
    w0_pad = jnp.zeros((Ocp, Cp), f32).at[:Oc, :C].set(w_conv[:, :, 0].astype(f32))
    w1_pad = jnp.zeros((Ocp, Cp), f32).at[:Oc, :C].set(w_conv[:, :, 1].astype(f32))
    w_fused = jnp.concatenate(
        [jnp.kron(eye, wseq_pad), jnp.kron(eye, w0_pad), jnp.kron(eye, w1_pad)],
        axis=0).astype(bf16)                                  # (Mr, TB*Cp)

    # Batch-invariant adjacency operands.  Note: A in bf16 is exact only while
    # per-(dst,src) edge multiplicities stay < 256 (fine for contact maps).
    a_pad = jnp.zeros((Lp, Lp), f32).at[:L, :L].set(adj_ds.astype(f32)).astype(bf16)
    srccnt = jnp.zeros((1, Lp), f32).at[0, :L].set(src_count.astype(f32))
    adjsum_row = adj_sum.astype(f32)
    inv_full = 1.0 / jnp.where(adjsum_row == 0.0, 1.0, adjsum_row)
    inv_den = jnp.zeros((1, Lp), f32).at[0, :L].set(inv_full)   # hoisted normalize

    bias_vec = (bias.astype(f32) if bias is not None
                else jnp.zeros((out_features,), f32))
    b_seq = jnp.zeros((Fsp, 1), f32).at[:Fs, 0].set(bias_vec[:Fs])
    b_pw = jnp.zeros((Ocp, 1), f32).at[:Oc, 0].set(bias_vec[Fs:Fs + Oc])
    b_seq_tile = jnp.tile(b_seq, (TB, 1))                     # (TB*Fsp, 1)
    b_pw_tile = jnp.tile(b_pw, (TB, 1))                       # (TB*Ocp, 1)

    vmem_limit = int(min(max(2 * _vmem_estimate(TB, Cp, Fsp, Ocp, Lp),
                             32 * 1024 * 1024),
                         60 * 1024 * 1024))

    kernel = functools.partial(
        pairwise_seq_conv_kernel,
        TB=TB, Fsp=Fsp, Ocp=Ocp, normalize=normalize)

    single = pl.Buffered(1)   # batch-invariant inputs: no double buffering
    out_seq2, out_pw2 = pl.pallas_call(
        kernel,
        out_shape=(jax.ShapeDtypeStruct((Np * Fsp, Lp), f32),
                   jax.ShapeDtypeStruct((Np * Ocp, Lp), f32)),
        grid=(Np // TB,),
        in_specs=[
            pl.BlockSpec((TB * Cp, Lp), lambda n: (n, 0)),                    # x tile
            pl.BlockSpec((Mr, TB * Cp), lambda n: (0, 0), pipeline_mode=single),  # fused W
            pl.BlockSpec((Lp, Lp), lambda n: (0, 0), pipeline_mode=single),   # A
            pl.BlockSpec((1, Lp), lambda n: (0, 0), pipeline_mode=single),    # src_count
            pl.BlockSpec((1, Lp), lambda n: (0, 0), pipeline_mode=single),    # 1/adj_sum
            pl.BlockSpec((TB * Fsp, 1), lambda n: (0, 0), pipeline_mode=single),  # b_seq
            pl.BlockSpec((TB * Ocp, 1), lambda n: (0, 0), pipeline_mode=single),  # b_pw
        ],
        out_specs=(pl.BlockSpec((TB * Fsp, Lp), lambda n: (n, 0)),
                   pl.BlockSpec((TB * Ocp, Lp), lambda n: (n, 0))),
        compiler_params=pltpu.CompilerParams(
            dimension_semantics=("parallel",),
            vmem_limit_bytes=vmem_limit,
        ),
    )(x_flat, w_fused, a_pad, srccnt, inv_den, b_seq_tile, b_pw_tile)

    # Host-side epilogue: trim padding, append the batch-invariant counts row.
    out_seq = out_seq2.reshape(Np, Fsp, Lp)[:N, :Fs, :L]
    out_pw = out_pw2.reshape(Np, Ocp, Lp)[:N, :Oc, :L]
    parts = [out_seq, out_pw]
    if add_counts:
        cnt = adjsum_row[:L] + bias_vec[Fs + Oc]
        parts.append(jnp.broadcast_to(cnt[None, None, :], (N, 1, L)))
    return jnp.concatenate(parts, axis=1)


def _numpy_reference(seq, w_seq, w_conv, bias, adj_src, adj_dst, adj_sum,
                     *, normalize=True, add_counts=True):
    """Reference in the original (E, L) one-hot formulation, f64."""
    seq = np.asarray(seq, np.float64)
    w_seq = np.asarray(w_seq, np.float64)
    w_conv = np.asarray(w_conv, np.float64)
    adj_src = np.asarray(adj_src, np.float64)
    adj_dst = np.asarray(adj_dst, np.float64)
    adj_sum = np.asarray(adj_sum, np.float64)
    N, C, L = seq.shape

    x_seq = np.einsum('oc,ncl->nol', w_seq, seq)
    x_src = np.einsum('ncl,el->nce', seq, adj_src)
    x_dst = np.einsum('ncl,el->nce', seq, adj_dst)
    y = (np.einsum('oc,nce->noe', w_conv[:, :, 0], x_src)
         + np.einsum('oc,nce->noe', w_conv[:, :, 1], x_dst))
    x_pw = np.einsum('noe,el->nol', y, adj_src)
    if normalize:
        denom = np.where(adj_sum == 0.0, 1.0, adj_sum)
        x_pw = x_pw / denom
    parts = [x_seq, x_pw]
    if add_counts:
        parts.append(np.broadcast_to(adj_sum, (N, 1, L)))
    out = np.concatenate(parts, axis=1)
    if bias is not None:
        out = out + np.asarray(bias, np.float64)[None, :, None]
    return out


if __name__ == "__main__":
    # PairwiseSeqConv(in_features=4, out_features=8, passthrough_fraction=0.5,
    #   bias=True, normalize=True, add_counts=True); plain `_conv` path.
    N, C, L = 4, 4, 16
    out_features = 8
    passthrough_fraction = 0.5
    num_seq_features = int(out_features * passthrough_fraction)      # 4
    pw_out = out_features - num_seq_features                          # 4
    conv_out = pw_out - 1                                             # add_counts -> 3

    # Deterministic synthetic sparse adjacency (symmetric contact map with
    # distances), including one duplicate edge pair to exercise duplicate-edge
    # accumulation in the reassociated (L, L) formulation.
    edges = []
    for i in range(L - 1):
        edges.append((i, i + 1, 1.5))
        edges.append((i + 1, i, 1.5))
    for i in range(L - 4):
        edges.append((i, i + 4, 5.2))
        edges.append((i + 4, i, 5.2))
    edges.append((2, 3, 1.5))
    edges.append((3, 2, 1.5))
    E = len(edges)

    adj_dense = np.zeros((L, L), np.float32)
    adj_src_np = np.zeros((E, L), np.float32)   # adj_pw[0::2]
    adj_dst_np = np.zeros((E, L), np.float32)   # adj_pw[1::2]
    adj_ds_np = np.zeros((L, L), np.float32)    # A[dst, src] = #edges
    src_count_np = np.zeros((L,), np.float32)
    for k, (i, j, v) in enumerate(edges):
        adj_dense[i, j] += v
        adj_src_np[k, i] = 1.0
        adj_dst_np[k, j] = 1.0
        adj_ds_np[j, i] += 1.0
        src_count_np[i] += 1.0
    adj_sum_np = adj_dense.sum(axis=0)          # adj.to_dense().sum(dim=0)
    assert adj_ds_np.max() < 256.0              # bf16-exact edge multiplicities

    # Deterministic parameter init (synthetic, not a checkpoint load).
    key = jax.random.PRNGKey(0)
    k1, k2, k3, k4 = jax.random.split(key, 4)
    w_seq = 0.1 * jax.random.normal(k1, (num_seq_features, C), jnp.float32)
    w_conv = 0.1 * jax.random.normal(k2, (conv_out, C, 2), jnp.float32)
    stdv = 1.0 / np.sqrt(out_features)
    bias = jax.random.uniform(k3, (out_features,), jnp.float32, -stdv, stdv)
    seq = jax.random.normal(k4, (N, C, L), jnp.float32)

    out = pairwise_seq_conv(seq, w_seq, w_conv, bias,
                            jnp.asarray(adj_ds_np), jnp.asarray(src_count_np),
                            jnp.asarray(adj_sum_np),
                            normalize=True, add_counts=True, batch_block=2)
    out = jax.block_until_ready(out)

    ref = _numpy_reference(seq, w_seq, w_conv, bias, adj_src_np, adj_dst_np,
                           adj_sum_np, normalize=True, add_counts=True)
    assert out.shape == (N, out_features, L)
    np.testing.assert_allclose(np.asarray(out), ref, rtol=2e-2, atol=2e-2)

    print("KERNEL_OK")
</pallas_src>

<mosaic_0001>
module attributes {stable_mosaic.version = 11 : i64} {
  func.func @pairwise_seq_conv_kernel(%arg0: i32, %arg1: memref<16x128xbf16, #tpu.memory_space<vmem>>, %arg2: memref<48x16xbf16, #tpu.memory_space<vmem>>, %arg3: memref<128x128xbf16, #tpu.memory_space<vmem>>, %arg4: memref<1x128xf32, #tpu.memory_space<vmem>>, %arg5: memref<1x128xf32, #tpu.memory_space<vmem>>, %arg6: memref<16x1xf32, #tpu.memory_space<vmem>>, %arg7: memref<16x1xf32, #tpu.memory_space<vmem>>, %arg8: memref<16x128xf32, #tpu.memory_space<vmem>>, %arg9: memref<16x128xf32, #tpu.memory_space<vmem>>) attributes {dimension_semantics = [#tpu.dimension_semantics<parallel>], iteration_bounds = array<i64: 2>, scalar_prefetch = 0 : i64, scratch_operands = 0 : i64, tpu.core_type = #tpu.core_type<tc>, window_params = [{transform_indices = @transform_0, window_bounds = array<i64: 16, 128>}, {pipeline_mode = #tpu.pipeline_mode<synchronous>, transform_indices = @transform_1, window_bounds = array<i64: 48, 16>}, {pipeline_mode = #tpu.pipeline_mode<synchronous>, transform_indices = @transform_2, window_bounds = array<i64: 128, 128>}, {pipeline_mode = #tpu.pipeline_mode<synchronous>, transform_indices = @transform_3, window_bounds = array<i64: 1, 128>}, {pipeline_mode = #tpu.pipeline_mode<synchronous>, transform_indices = @transform_4, window_bounds = array<i64: 1, 128>}, {pipeline_mode = #tpu.pipeline_mode<synchronous>, transform_indices = @transform_5, window_bounds = array<i64: 16, 1>}, {pipeline_mode = #tpu.pipeline_mode<synchronous>, transform_indices = @transform_6, window_bounds = array<i64: 16, 1>}, {transform_indices = @transform_7, window_bounds = array<i64: 16, 128>}, {transform_indices = @transform_8, window_bounds = array<i64: 16, 128>}]} {
    %c0 = arith.constant 0 : index
    %c0_0 = arith.constant 0 : index
    %0 = vector.load %arg1[%c0, %c0_0] : memref<16x128xbf16, #tpu.memory_space<vmem>>, vector<16x128xbf16>
    %c0_1 = arith.constant 0 : index
    %c0_2 = arith.constant 0 : index
    %1 = vector.load %arg2[%c0_1, %c0_2] : memref<48x16xbf16, #tpu.memory_space<vmem>>, vector<48x16xbf16>
    %cst = arith.constant dense<0.000000e+00> : vector<48x128xf32>
    %2 = tpu.matmul %1, %0, %cst {dimension_numbers = #tpu.dot_dimension_numbers<[1], [0], [0], [1], [0, 0, 1, 1], [], []>} : vector<48x16xbf16>, vector<16x128xbf16>, vector<48x128xf32> -> vector<48x128xf32>
    %3 = vector.extract_strided_slice %2 {offsets = [0, 0], sizes = [16, 128], strides = [1, 1]} : vector<48x128xf32> to vector<16x128xf32>
    %4 = vector.extract_strided_slice %2 {offsets = [16, 0], sizes = [16, 128], strides = [1, 1]} : vector<48x128xf32> to vector<16x128xf32>
    %5 = vector.extract_strided_slice %2 {offsets = [32, 0], sizes = [16, 128], strides = [1, 1]} : vector<48x128xf32> to vector<16x128xf32>
    %6 = arith.truncf %5 : vector<16x128xf32> to vector<16x128xbf16>
    %c0_3 = arith.constant 0 : index
    %c0_4 = arith.constant 0 : index
    %7 = vector.load %arg3[%c0_3, %c0_4] : memref<128x128xbf16, #tpu.memory_space<vmem>>, vector<128x128xbf16>
    %cst_5 = arith.constant dense<0.000000e+00> : vector<16x128xf32>
    %8 = tpu.matmul %6, %7, %cst_5 {dimension_numbers = #tpu.dot_dimension_numbers<[1], [0], [0], [1], [0, 0, 1, 1], [], []>} : vector<16x128xbf16>, vector<128x128xbf16>, vector<16x128xf32> -> vector<16x128xf32>
    %c0_6 = arith.constant 0 : index
    %c0_7 = arith.constant 0 : index
    %9 = vector.load %arg4[%c0_6, %c0_7] : memref<1x128xf32, #tpu.memory_space<vmem>>, vector<1x128xf32>
    %10 = vector.broadcast %9 : vector<1x128xf32> to vector<16x128xf32>
    %11 = arith.mulf %4, %10 : vector<16x128xf32>
    %12 = arith.addf %11, %8 : vector<16x128xf32>
    %c0_8 = arith.constant 0 : index
    %c0_9 = arith.constant 0 : index
    %13 = vector.load %arg5[%c0_8, %c0_9] : memref<1x128xf32, #tpu.memory_space<vmem>>, vector<1x128xf32>
    %14 = vector.broadcast %13 : vector<1x128xf32> to vector<16x128xf32>
    %15 = arith.mulf %12, %14 : vector<16x128xf32>
    %c0_10 = arith.constant 0 : index
    %c0_11 = arith.constant 0 : index
    %16 = vector.load %arg6[%c0_10, %c0_11] : memref<16x1xf32, #tpu.memory_space<vmem>>, vector<16x1xf32>
    %17 = vector.broadcast %16 : vector<16x1xf32> to vector<16x128xf32>
    %18 = arith.addf %3, %17 : vector<16x128xf32>
    %c0_12 = arith.constant 0 : index
    %c0_13 = arith.constant 0 : index
    %19 = vector.load %arg8[%c0_12, %c0_13] : memref<16x128xf32, #tpu.memory_space<vmem>>, vector<16x128xf32>
    tpu.vector_store %arg8[%c0_12, %c0_13], %18 {strides = array<i32>} : memref<16x128xf32, #tpu.memory_space<vmem>>, vector<16x128xf32>,
    %c0_14 = arith.constant 0 : index
    %c0_15 = arith.constant 0 : index
    %20 = vector.load %arg7[%c0_14, %c0_15] : memref<16x1xf32, #tpu.memory_space<vmem>>, vector<16x1xf32>
    %21 = vector.broadcast %20 : vector<16x1xf32> to vector<16x128xf32>
    %22 = arith.addf %15, %21 : vector<16x128xf32>
    %c0_16 = arith.constant 0 : index
    %c0_17 = arith.constant 0 : index
    %23 = vector.load %arg9[%c0_16, %c0_17] : memref<16x128xf32, #tpu.memory_space<vmem>>, vector<16x128xf32>
    tpu.vector_store %arg9[%c0_16, %c0_17], %22 {strides = array<i32>} : memref<16x128xf32, #tpu.memory_space<vmem>>, vector<16x128xf32>,
    return
  }
  func.func @transform_0(%arg0: i32) -> (i32, i32) {
    %c0_i32 = arith.constant 0 : i32
    %c0_i32_0 = arith.constant 0 : i32
    return %arg0, %c0_i32 : i32, i32
  }
  func.func @transform_1(%arg0: i32) -> (i32, i32) {
    %c0_i32 = arith.constant 0 : i32
    %c0_i32_0 = arith.constant 0 : i32
    %c0_i32_1 = arith.constant 0 : i32
    return %c0_i32, %c0_i32_0 : i32, i32
  }
  func.func @transform_2(%arg0: i32) -> (i32, i32) {
    %c0_i32 = arith.constant 0 : i32
    %c0_i32_0 = arith.constant 0 : i32
    %c0_i32_1 = arith.constant 0 : i32
    return %c0_i32, %c0_i32_0 : i32, i32
  }
  func.func @transform_3(%arg0: i32) -> (i32, i32) {
    %c0_i32 = arith.constant 0 : i32
    %c0_i32_0 = arith.constant 0 : i32
    %c0_i32_1 = arith.constant 0 : i32
    return %c0_i32, %c0_i32_0 : i32, i32
  }
  func.func @transform_4(%arg0: i32) -> (i32, i32) {
    %c0_i32 = arith.constant 0 : i32
    %c0_i32_0 = arith.constant 0 : i32
    %c0_i32_1 = arith.constant 0 : i32
    return %c0_i32, %c0_i32_0 : i32, i32
  }
  func.func @transform_5(%arg0: i32) -> (i32, i32) {
    %c0_i32 = arith.constant 0 : i32
    %c0_i32_0 = arith.constant 0 : i32
    %c0_i32_1 = arith.constant 0 : i32
    return %c0_i32, %c0_i32_0 : i32, i32
  }
  func.func @transform_6(%arg0: i32) -> (i32, i32) {
    %c0_i32 = arith.constant 0 : i32
    %c0_i32_0 = arith.constant 0 : i32
    %c0_i32_1 = arith.constant 0 : i32
    return %c0_i32, %c0_i32_0 : i32, i32
  }
  func.func @transform_7(%arg0: i32) -> (i32, i32) {
    %c0_i32 = arith.constant 0 : i32
    %c0_i32_0 = arith.constant 0 : i32
    return %arg0, %c0_i32 : i32, i32
  }
  func.func @transform_8(%arg0: i32) -> (i32, i32) {
    %c0_i32 = arith.constant 0 : i32
    %c0_i32_0 = arith.constant 0 : i32
    return %arg0, %c0_i32 : i32, i32
  }
}

</mosaic_0001>

<bundles_post_ra>
// kernel: tpu_custom_call.1
= control target key start
LH: loop header
LB: loop body
LE: loop exit
PB: predicated region body
PF: predicated region fallthrough
CT: control target
= control target key end

     0   :  { %14 = vsyncpa [#allocation3], 0  ;;  %s1341_s0 = inlined_call_operand.hbm [shape: bf16[32,128], index: 0, kind: input, shape index: {}]   ;;  %s1342_s1 = inlined_call_operand.vmem [shape: bf16[48,16], index: 1, kind: input, shape index: {}]   ;;  %s1343_s2 = inlined_call_operand.vmem [shape: bf16[128,128], index: 2, kind: input, shape index: {}]   ;;  %s1344_s3 = inlined_call_operand.vmem [shape: f32[1,128], index: 3, kind: input, shape index: {}]   ;;  %s1345_s4 = inlined_call_operand.vmem [shape: f32[1,128], index: 4, kind: input, shape index: {}]   ;;  %s1346_s5 = inlined_call_operand.vmem [shape: f32[16,1], index: 5, kind: input, shape index: {}]   ;;  %s1347_s6 = inlined_call_operand.vmem [shape: f32[16,1], index: 6, kind: input, shape index: {}]   ;;  %s1348_s7 = inlined_call_operand.hbm [shape: f32[32,128], index: 7, kind: output, shape index: {0}]   ;;  %s1349_s8 = inlined_call_operand.hbm [shape: f32[32,128], index: 8, kind: output, shape index: {1}]  }
   0x1   :  { %16 = vsyncpa [#allocation3 + $0x1], 0 }
   0x2   :  { %17 = vsyncpa [#allocation4], 0 }
   0x3   :  { %19 = vsyncpa [#allocation4 + $0x1], 0 }
   0x4   :  { %20 = vsyncpa [#allocation7], 0 }
   0x5   :  { %22 = vsyncpa [#allocation7 + $0x1], 0  ;;  %s1075_s27 = smov 0   ;;  %s1077_s28 = smov 0  }
   0x6   :  { %s1079_s29 = smov 0   ;;  %s1081_s30 = smov 0  }
   0x7 LB: > { %s1096_s9 = sadd.s32 4294967295, %s1018_s30   ;;  %s733_s10 = sadd.s32 4294967294, %s1018_s30   ;;  %s1018_s30 = sphi %s1081_s30, %s1366_s30   ;;  %s1014_s29 = sphi %s1079_s29, %s1365_s29   ;;  %s1010_s28 = sphi %s1077_s28, %s1364_s28   ;;  %s1006_s27 = sphi %s1075_s27, %s1363_s27  }
   0x8   : > { %s1100_s11 = sadd.s32 1, %s1018_s30   ;;  %s35_s12 = sadd.s32 1, %s1014_s29 }
   0x9   : > { %s32_s13 = ssub.s32 %s1018_s30, %s1100_s11  ;;  %p42_p0 = scmp.ne.s32.totalorder %s1014_s29, %s1010_s28 }
   0xa   : > { %p33_p1 = scmp.eq.s32.totalorder %s32_s13, 0  ;;  %p43_p2 = scmp.eq.s32.totalorder %s1018_s30, 0 }
   0xb   : > { %p48_p3 = scmp.ne.s32.totalorder %s1010_s28, %s1006_s27  ;;  %p49_p4 = scmp.eq.s32.totalorder %s1096_s9, 0 }
   0xc   : > { %s1112_s14 = scalar_select %p33_p1, %s1014_s29, %s35_s12  }
   0xd   : > { %p1114_p5 = por %p43_p2, %p42_p0  ;;  %p1118_p6 = por %p49_p4, %p48_p3 }
   0xe   : > { %p198_p7 = scmp.eq.s32.totalorder %s1096_s9, 1  ;;  %p204_p8 = scmp.eq.s32.totalorder %s733_s10, 1 }
   0xf   : > { %p835_p10 = scmp.lt.s32.totalorder %s1018_s30, 2  ;;  %s268_s19 = sand.u32 1, %s1014_s29  }
  0x10   : > { %p1125_p11 = por %p198_p7, %p42_p0  ;;  %p1129_p12 = por %p204_p8, %p48_p3 }
  0x11   : > { %s768_s20 = sshll.u32 %s1018_s30, 7  ;;  %s736_s21 = sshll.u32 %s268_s19, 3 }
  0x12   : > { %s1355_s17 = scalar_select %p1125_p11, 1, 0 }
  0x13   : > { %s1356_s18 = scalar_select %p1129_p12, 1, 0 }
  0x14   : > { %s1138_s24 = scalar_lea.hbm %s1341_s0, %s768_s20  ;;  %s272_s25 = scalar_lea.vmem [#allocation2], %s736_s21 }
  0x15   : > { %s279_s26 = sshll.u32 %s272_s25, 4  ;;  %p1142_p13 = pnand %p835_p10, %p1114_p5  ;;  %s1146_s26 = int_to_ptr.vmem [resolvable:$true] %s279_s26 }
  0x16   : > { %s1148_s12 = scalar_lea.sflag [#allocation3], %s268_s19  ;;  %s890_s13 = scalar_lea.hbm %s1138_s24, 128 }
  0x17   : > { %p891_p0 = scmp.ne.s32.totalorder %s1138_s24, %s890_s13  ;;  %p892_p1 = pneg %p1142_p13 }
  0x18   : > { %s895_s21 = scalar_lea.hbm %s1341_s0, 256  ;;  %p896_p4 = scmp.lt.u32.totalorder %s1138_s24, %s1341_s0 }
  0x19   : > { %p893_p2 = pnand %p892_p1, %p891_p0  ;;  %p897_p5 = scmp.lt.u32.totalorder %s895_s21, %s890_s13 }
  0x1a   : > { %p899_p8 = scmp.lt.u32.totalorder %s890_s13, %s1138_s24 }
  0x1b   : > { %p894_p3 = pneg %p893_p2  ;;  %p898_p7 = por %p897_p5, %p896_p4 }
  0x1d   : > { %p900_p10 = por %p899_p8, %p898_p7 }
  0x1f   : > { %p901_p9 = pnand %p900_p10, %p894_p3 }
  0x21   : > { %904 = shalt.err (!%p901_p9)
}
  0x22   : > { %s905_s19 = scalar_lea.vmem %s1146_s26, 128  ;;  %s1020_s25 = smov [#allocation2]  }
  0x23   : > { %p906_p0 = scmp.ne.s32.totalorder %s1146_s26, %s905_s19  ;;  %s910_s20 = sshll.u32 %s1020_s25, 4  ;;  %s911_s20 = int_to_ptr.vmem [resolvable:$false] %s910_s20 }
  0x24   : > { %s912_s15 = scalar_lea.vmem %s911_s20, 256  ;;  %p913_p11 = scmp.lt.s32.totalorder %s1146_s26, %s911_s20 }
  0x25   : > { %p908_p2 = pnand %p906_p0, %p892_p1  ;;  %p914_p4 = scmp.lt.s32.totalorder %s912_s15, %s905_s19 }
  0x27   : > { %p909_p12 = pneg %p908_p2  ;;  %p915_p5 = por %p914_p4, %p913_p11 }
  0x29   : > { %p916_p7 = pnand %p915_p5, %p909_p12 }
  0x2b   : > { %919 = shalt.err (!%p916_p7)
}
  0x2c   : > { %s1021_s13 = smov 64   ;;  %s1022_s21 = smov 4  }
  0x2d   : > { %827 = dma.hbm_to_vmem [thread:$0]  (!%p1142_p13), %s1138_s24, 128, %s1146_s26, %s1148_s12, %s1021_s13, %s1021_s13, %s1022_s21  }
  0x2e   : > { %p739_p9 = scmp.ge.s32.totalorder %s1018_s30, 1  ;;  %p287_p1 = scmp.lt.s32.totalorder %s1018_s30, 3 }
  0x30   : > { %p288_p3 = pnand %p739_p9, %p287_p1 }
  0x31   : > { %s1179_s22 = sand.u32 (!%p288_p3), 1, %s1010_s28  }
  0x32   : > { %291 = sbr.rel (%p288_p3) target bundleno = 532 (0x214), region = 48  ;;  %s740_s23 = sshll.u32 (!%p288_p3), %s1179_s22, 3 }
  0x33   : > { %s294_s19 = scalar_lea.sflag (!%p288_p3), [#allocation3], %s1179_s22  ;;  %s297_s25 = scalar_lea.vmem (!%p288_p3), [#allocation2], %s740_s23 }
  0x39   : > { %993 = dma.done.wait (%p1118_p6), %s294_s19, 128  }
  0x3a   : > { %995 = vsyncadd (%p1118_p6), %s294_s19, 4294967168  ;;  %v1023_v0 = vmov 0.0   ;;  %vm1024_vm0 = vmmov 0   ;;  %v1025_v1 = vmov 0   ;;  %v878_v2 = vld [vmem:[%s297_s25] sm:$0xff]   ;;  %vm368_vm1 = vcmask 130048  }
  0x3b   : > { %784 = vmatprep.subr.bf16.mxu0 %v1023_v0  ;;  %786 = vmatprep.mubr.msk.bf16.mxu0 %vm1024_vm0, %v1023_v0  ;;  %v879_v3 = vld [vmem:[%s1342_s1] sm:$0xff]   ;;  %v562_v6 = vld [vmem:[%s1346_s5 + $0x8] sm:$0xff]  ;;  %v884_v9 = vld [vmem:[%s1343_s2 + $0x10] sm:$0xff]   ;;  %s741_s15 = sshll.u32 %s1179_s22, 4  ;;  %s1351_s23 = sshll.u32 %s1096_s9, 8 }
  0x3c   : > { %876 = vset.pattern.permute.xlu0 %v1025_v1  ;;  %798 = vmatprep.subr.bf16.mxu1 %v1023_v0  ;;  %v561_v4 = vld [vmem:[%s1346_s5] sm:$0xff]  ;;  %v880_v7 = vld [vmem:[%s1342_s1 + $0x8] sm:$0xff]   ;;  %v881_v10 = vld [vmem:[%s1342_s1 + $0x10] sm:$0xff]   ;;  %s327_s13 = scalar_lea.vmem [#allocation5], %s741_s15  ;;  %s1250_s24 = scalar_lea.hbm %s1348_s7, %s1351_s23 }
  0x3d   : > { %814 = vmatprep.mubr.msk.bf16.mxu1 %vm1024_vm0, %v1023_v0  ;;  %877 = vset.pattern.permute.xlu1 %v1025_v1  ;;  %v882_v5 = vld [vmem:[%s1343_s2] sm:$0xff]   ;;  %v883_v8 = vld [vmem:[%s1343_s2 + $0x8] sm:$0xff]   ;;  %v885_v11 = vld [vmem:[%s1343_s2 + $0x18] sm:$0xff]   ;;  %s612_s21 = sshll.u32 %s327_s13, 4  ;;  %s594_s26 = scalar_lea.sflag [#allocation4], %s1179_s22  ;;  %s1242_s21 = int_to_ptr.vmem [resolvable:$true] %s612_s21 }
  0x3e   : > { %785 = vmatpush3.bf16.msra.mxu0 %v878_v2  ;;  %565 = vperm.xlu0 %876, %v561_v4   ;;  %v886_v12 = vld [vmem:[%s1343_s2 + $0x20] sm:$0xff]   ;;  %v887_v13 = vld [vmem:[%s1343_s2 + $0x28] sm:$0xff]   ;;  %v888_v14 = vld [vmem:[%s1343_s2 + $0x30] sm:$0xff]   ;;  %s920_s16 = scalar_lea.vmem %s1242_s21, 256  ;;  %p1358_p11 = scmp.ne.s32.totalorder %s1355_s17, 0 }
  0x3f   : > { %799 = vmatpush3.bf16.msra.mxu1 %v882_v5  ;;  %v889_v15 = vld [vmem:[%s1343_s2 + $0x38] sm:$0xff]   ;;  %v577_v16 = vld [vmem:[%s1347_s6] sm:$0xff]  ;;  %v578_v17 = vld [vmem:[%s1347_s6 + $0x8] sm:$0xff]  ;;  %p921_p6 = scmp.ne.s32.totalorder %s1242_s21, %s920_s16  ;;  %s1026_s10 = smov [#allocation5]  }
  0x40   : > { %800 = vmatprep.subr.bf16.mxu1 %v1023_v0  ;;  %581 = vperm.xlu1 %877, %v577_v16   ;;  %s924_s12 = sshll.u32 %s1026_s10, 4  ;;  %s925_s12 = int_to_ptr.vmem [resolvable:$false] %s924_s12 }
  0x41   : > { %787 = vmatmul.mubr.msk.bf16.vlgmr.msra.gmra.mrb[0].mxu0 %vm368_vm1, %v879_v3  ;;  %p922_p12 = pnand %p921_p6, %p1358_p11  ;;  %s926_s20 = scalar_lea.vmem %s925_s12, 512 }
  0x42   : > { %790 = vmatprep.mubr.msk.bf16.mxu0 %vm1024_vm0, %v1023_v0  ;;  %570 = vperm.xlu0 %876, %v562_v6   ;;  %p927_p8 = scmp.lt.s32.totalorder %s1242_s21, %s925_s12  ;;  %p928_p10 = scmp.lt.s32.totalorder %s926_s20, %s920_s16 }
  0x43   : > { %801 = vmatpush3.bf16.msra.mxu1 %v883_v8  ;;  %p923_p13 = pneg %p922_p12 }
  0x44   : > { %802 = vmatprep.subr.bf16.mxu1 %v1023_v0  ;;  %586 = vperm.xlu1 %877, %v578_v17   ;;  %p929_p0 = por %p928_p10, %p927_p8 }
  0x46   : > { %p930_p2 = pnand %p929_p0, %p923_p13 }
  0x47   : > { %803 = vmatpush3.bf16.msra.mxu1 %v884_v9 }
  0x48   : > { %804 = vmatprep.subr.bf16.mxu1 %v1023_v0 }
  0x49   : > { %791 = vmatmul.mubr.msk.bf16.gmra.mrb[4].mxu0 %vm368_vm1, %v880_v7 }
  0x4a   : > { %794 = vmatprep.mubr.msk.bf16.mxu0 %vm1024_vm0, %v1023_v0 }
  0x4b   : > { %805 = vmatpush3.bf16.msra.mxu1 %v885_v11 }
  0x4c   : > { %806 = vmatprep.subr.bf16.mxu1 %v1023_v0 }
  0x4f   : > { %807 = vmatpush3.bf16.msra.mxu1 %v886_v12 }
  0x50   : > { %808 = vmatprep.subr.bf16.mxu1 %v1023_v0 }
  0x51   : > { %795 = vmatmul.mubr.msk.bf16.gmra.mrb[8].mxu0 %vm368_vm1, %v881_v10 }
  0x53   : > { %809 = vmatpush3.bf16.msra.mxu1 %v887_v13 }
  0x54   : > { %810 = vmatprep.subr.bf16.mxu1 %v1023_v0 }
  0x57   : > { %811 = vmatpush3.bf16.msra.mxu1 %v888_v14 }
  0x58   : > { %812 = vmatprep.subr.bf16.mxu1 %v1023_v0 }
  0x5b   : > { %813 = vmatpush3.bf16.msra.mxu1 %v889_v15 }
  0xbd   : > { %v566_v18 = vpop.permute.xlu0 %565 }
  0xc1   : > { %v571_v20 = vpop.permute.xlu0 %570 }
 0x114   : > { %v412_v19 = vpop.f32.mrb[0].mxu0 }
 0x115   : > { %v573_v21 = vadd.f32 %v566_v18, %v412_v19  ;;  %v788_v22 = vpop.f32.mrb[1].mxu0 }
 0x116   : > { %v415_v23 = vpop.f32.mrb[2].mxu0 }
 0x117   : > { %575 = vst [vmem:[%s327_s13] sm:$0xff] %v573_v21  ;;  %v574_v24 = vadd.f32 %v571_v20, %v415_v23  ;;  %v789_v25 = vpop.f32.mrb[3].mxu0 }
 0x119   : > { %576 = vst [vmem:[%s327_s13 + $0x8] sm:$0xff] %v574_v24 }
 0x11c   : > { %v420_v26 = vpop.f32.mrb[4].mxu0 }
 0x11d   : > { %v792_v27 = vpop.f32.mrb[5].mxu0 }
 0x11e   : > { %v423_v28 = vpop.f32.mrb[6].mxu0 }
 0x11f   : > { %v793_v29 = vpop.f32.mrb[7].mxu0 }
 0x124   : > { %v428_v30 = vpop.f32.mrb[8].mxu0 }
 0x125   : > { %v796_v31 = vpop.f32.mrb[9].mxu0 }
 0x126   : > { %v431_v32 = vpop.f32.mrb[10].mxu0 }
 0x127   : > { %v435_v33 = vpack.c.bf16 %v431_v32, %v428_v30  ;;  %v797_v34 = vpop.f32.mrb[11].mxu0 }
 0x129   : > { %815 = vmatmul.mubr.bf16.vlgmr.msra.gmra.mrb[0].mxu1 %v435_v33 }
 0x12a   : > { %933 = shalt.err (!%p930_p2)
}
 0x12b   : > { %s934_s13 = scalar_lea.hbm %s1250_s24, 256  ;;  %s938_s10 = scalar_lea.hbm %s1348_s7, 512 }
 0x12c   : > { %p935_p4 = scmp.ne.s32.totalorder %s1250_s24, %s934_s13  ;;  %p939_p9 = scmp.lt.u32.totalorder %s1250_s24, %s1348_s7 }
 0x12d   : > { %p940_p1 = scmp.lt.u32.totalorder %s938_s10, %s934_s13  ;;  %p942_p6 = scmp.lt.u32.totalorder %s934_s13, %s1250_s24 }
 0x12e   : > { %p936_p5 = pnand %p935_p4, %p1358_p11 }
 0x12f   : > { %p941_p3 = por %p940_p1, %p939_p9 }
 0x130   : > { %p937_p7 = pneg %p936_p5 }
 0x131   : > { %p943_p12 = por %p942_p6, %p941_p3 }
 0x133   : > { %p944_p13 = pnand %p943_p12, %p937_p7 }
 0x135   : > { %947 = shalt.err (!%p944_p13)
}
 0x136   : > { %s1352_s16 = smov 128   ;;  %s1028_s20 = smov 8   ;;  %v758_v35 = vld [vmem:[%s1344_s3] ss:$0 sm:$0xff]  ;;  %v582_v37 = vpop.permute.xlu1 %581 }
 0x137   : > { %820 = dma.vmem_to_hbm [thread:$0]  (%p1358_p11), %s1242_s21, 256, %s1250_s24, %s594_s26, %s1352_s16, %s1352_s16, %s1028_s20   ;;  %v548_v36 = vmul.f32 %v758_v35, %v420_v26  ;;  %v549_v40 = vmul.f32 %v758_v35, %v423_v28 }
 0x138   : > { %v759_v39 = vld [vmem:[%s1345_s4] ss:$0 sm:$0xff]  ;;  %s334_s10 = scalar_lea.vmem [#allocation6], %s741_s15  ;;  %s1359_s24 = sshll.u32 %s1096_s9, 8 }
 0x139   : > { %s628_s21 = sshll.u32 %s334_s10, 4  ;;  %s1294_s15 = scalar_lea.hbm %s1349_s8, %s1359_s24  ;;  %s1287_s21 = int_to_ptr.vmem [resolvable:$true] %s628_s21 }
 0x13a   : > { %v587_v49 = vpop.permute.xlu1 %586  ;;  %s599_s23 = scalar_lea.sflag [#allocation7], %s1179_s22  ;;  %s948_s19 = scalar_lea.vmem %s1287_s21, 256 }
 0x13b   : > { %p949_p8 = scmp.ne.s32.totalorder %s1287_s21, %s948_s19  ;;  %s1029_s13 = smov [#allocation6]  }
 0x13c   : > { %s952_s25 = sshll.u32 %s1029_s13, 4  ;;  %s953_s25 = int_to_ptr.vmem [resolvable:$false] %s952_s25 }
 0x13d   : > { %p950_p10 = pnand %p949_p8, %p1358_p11  ;;  %s954_s16 = scalar_lea.vmem %s953_s25, 512 }
 0x13e   : > { %p955_p2 = scmp.lt.s32.totalorder %s1287_s21, %s953_s25  ;;  %p956_p4 = scmp.lt.s32.totalorder %s954_s16, %s948_s19 }
 0x13f   : > { %p951_p0 = pneg %p950_p10 }
 0x140   : > { %p957_p5 = por %p956_p4, %p955_p2 }
 0x142   : > { %p958_p7 = pnand %p957_p5, %p951_p0 }
 0x1fc   : > { %v534_v38 = vpop.f32.mrb[0].mxu1 }
 0x1fd   : > { %v550_v41 = vadd.f32 %v548_v36, %v534_v38  ;;  %v816_v42 = vpop.f32.mrb[1].mxu1 }
 0x1fe   : > { %v537_v43 = vpop.f32.mrb[2].mxu1 }
 0x1ff   : > { %v559_v44 = vmul.f32 %v759_v39, %v550_v41  ;;  %v551_v45 = vadd.f32 %v549_v40, %v537_v43  ;;  %v817_v46 = vpop.f32.mrb[3].mxu1 }
 0x201   : > { %v589_v47 = vadd.f32 %v582_v37, %v559_v44  ;;  %v560_v48 = vmul.f32 %v759_v39, %v551_v45 }
 0x203   : > { %591 = vst [vmem:[%s334_s10] sm:$0xff] %v589_v47  ;;  %v590_v50 = vadd.f32 %v587_v49, %v560_v48 }
 0x205   : > { %592 = vst [vmem:[%s334_s10 + $0x8] sm:$0xff] %v590_v50 }
 0x206   : > { %961 = shalt.err (!%p958_p7)
}
 0x207   : > { %s962_s9 = scalar_lea.hbm %s1294_s15, 256  ;;  %s966_s26 = scalar_lea.hbm %s1349_s8, 512 }
 0x208   : > { %p963_p9 = scmp.ne.s32.totalorder %s1294_s15, %s962_s9  ;;  %p967_p6 = scmp.lt.u32.totalorder %s1294_s15, %s1349_s8 }
 0x209   : > { %p968_p12 = scmp.lt.u32.totalorder %s966_s26, %s962_s9  ;;  %p970_p8 = scmp.lt.u32.totalorder %s962_s9, %s1294_s15 }
 0x20a   : > { %p964_p1 = pnand %p963_p9, %p1358_p11 }
 0x20b   : > { %p969_p13 = por %p968_p12, %p967_p6 }
 0x20c   : > { %p965_p3 = pneg %p964_p1 }
 0x20d   : > { %p971_p10 = por %p970_p8, %p969_p13 }
 0x20f   : > { %p972_p0 = pnand %p971_p10, %p965_p3 }
 0x211   : > { %975 = shalt.err (!%p972_p0)
}
 0x212   : > { %s1360_s16 = smov 128  }
 0x213   : > { %821 = dma.vmem_to_hbm [thread:$0]  (%p1358_p11), %s1287_s21, 256, %s1294_s15, %s599_s23, %s1360_s16, %s1360_s16, %s1028_s20  }
 0x214 PF: > { %s643_s19 = sand.u32 1, %s1006_s27   ;;  %p1361_p2 = scmp.ne.s32.totalorder %s1356_s18, 0 }
 0x215   : > { %p1362_p4 = scmp.ge.s32.totalorder %s1018_s30, 2  ;;  %s644_s25 = scalar_lea.sflag [#allocation4], %s643_s19 }
 0x217   : > { %p829_p5 = pnand %p1362_p4, %p1361_p2 }
 0x219   : > { %997 = dma.done.wait (!%p829_p5), %s644_s25, 256  }
 0x21a   : > { %999 = vsyncadd (!%p829_p5), %s644_s25, 4294967040  ;;  %s653_s17 = scalar_lea.sflag [#allocation7], %s643_s19 }
 0x21b   : > { %1001 = dma.done.wait (!%p829_p5), %s653_s17, 256  }
 0x21c   : > { %1003 = vsyncadd (!%p829_p5), %s653_s17, 4294967040  ;;  %p25_p11 = scmp.ge.s32.totalorder %s1100_s11, 4   ;;  %s1363_s27 = smov %s1010_s28 }
 0x21d   : > { %s1364_s28 = smov %s1014_s29  ;;  %s1365_s29 = smov %s1112_s14 }
 0x21e   : > { %s1366_s30 = smov %s1100_s11  ;;  %27 = sbr.rel (!%p25_p11) target bundleno = 7 (0x7), region = 110 }
 0x225   :  { %658 = vsyncpa [#allocation3], 1 }
 0x226   :  { %660 = vsyncpa [#allocation3 + $0x1], 1 }
 0x227   :  { %661 = vsyncpa [#allocation4], 1 }
 0x228   :  { %663 = vsyncpa [#allocation4 + $0x1], 1 }
 0x229   :  { %664 = vsyncpa [#allocation7], 1 }
 0x22a   :  { %666 = vsyncpa [#allocation7 + $0x1], 1 }

</bundles_post_ra>
